<compile_context>
chip_gen: v7x
topology: tpu7x:2x2x1
jax: 0.10.0
libtpu: 0.0.40
codegen_flags: <defaults>
</compile_context>

<pallas_src>
import math

import jax
import jax.numpy as jnp
from jax import lax
from jax.experimental import pallas as pl
from jax.experimental.pallas import tpu as pltpu


# ----------------------------- Pallas kernel --------------------------------
def make_mhca_kernel(num_heads, head_dim):
    def kernel(x_ref, y_ref, mask_ref,
               wq_ref, wk_ref, wv_ref,
               bq_ref, bk_ref, bv_ref,
               wo_ref, bo_ref,
               o_ref, vals_ref):
        # --- fused full-width projections (bf16 MXU operands, f32 accumulate).
        # Scale 1/sqrt(E) is already folded into wq/bq.
        q_all = (jnp.dot(y_ref[...], wq_ref[...],
                         preferred_element_type=jnp.float32)
                 + bq_ref[...]).astype(jnp.bfloat16)            # (tq, D)
        k_all = (jnp.dot(x_ref[...], wk_ref[...],
                         preferred_element_type=jnp.float32)
                 + bk_ref[...]).astype(jnp.bfloat16)            # (S, D)
        v_all = (jnp.dot(x_ref[...], wv_ref[...],
                         preferred_element_type=jnp.float32)
                 + bv_ref[...]).astype(jnp.bfloat16)            # (S, D)
        m = mask_ref[...]                                       # (tq, S) f32

        # --- per-head attention; H is a small compile-time constant.
        # TODO(synk): switch to lax.fori_loop + ref dynamic slices if H grows.
        for h in range(num_heads):
            sl = slice(h * head_dim, (h + 1) * head_dim)        # static lane slice
            q_h = q_all[:, sl]                                  # (tq, E) bf16
            k_h = k_all[:, sl]                                  # (S,  E) bf16
            v_h = v_all[:, sl]                                  # (S,  E) bf16
            # q @ k^T without an explicit transpose (contract last dims).
            s = lax.dot_general(q_h, k_h, (((1,), (1,)), ((), ())),
                                preferred_element_type=jnp.float32)  # (tq, S)
            s = s + m
            # Numerically stable softmax in f32; EUP approx reciprocal for the
            # normalization (within the bf16-level tolerance of this kernel).
            s = s - jnp.max(s, axis=-1, keepdims=True)
            p = jnp.exp(s)
            p = p * pl.reciprocal(jnp.sum(p, axis=-1, keepdims=True), approx=True)
            # Write this head's values into the lane-contiguous slab (folds the
            # head concat; enables one full-width output projection below).
            vals_ref[:, sl] = jnp.dot(p.astype(jnp.bfloat16), v_h,
                                      preferred_element_type=jnp.float32
                                      ).astype(jnp.bfloat16)

        # --- single full-width output projection.
        o_ref[...] = (jnp.dot(vals_ref[...], wo_ref[...],
                              preferred_element_type=jnp.float32)
                      + bo_ref[...]).astype(o_ref.dtype)

    return kernel


# -------------------- wrapper: weight prepack + pallas_call ------------------
def prepack_params(p, d_model, num_heads):
    """PyTorch-layout (out, in) weights -> full-width, head-major kernel operands."""
    H = num_heads
    E = d_model // num_heads
    D = d_model
    scale = 1.0 / math.sqrt(E)
    # q_layer: out feature f = h*E + e (already head-major). Fold softmax scale.
    wq = (p["w_q"].T * scale).astype(jnp.bfloat16)              # (D, D)
    bq = (p["b_q"] * scale).reshape(1, D).astype(jnp.float32)
    # kv_layer: out feature f = h*(2E) + part*E + e ; part 0 -> K, 1 -> V.
    kv_w = p["w_kv"].reshape(H, 2, E, D)
    wk = kv_w[:, 0].reshape(D, D).T.astype(jnp.bfloat16)        # (D, D) head-major cols
    wv = kv_w[:, 1].reshape(D, D).T.astype(jnp.bfloat16)        # (D, D)
    kv_b = p["b_kv"].reshape(H, 2, E)
    bk = kv_b[:, 0].reshape(1, D).astype(jnp.float32)
    bv = kv_b[:, 1].reshape(1, D).astype(jnp.float32)
    # linear_layer: input feature f = h*E + e (head-major concat of values).
    wo = p["w_o"].T.astype(jnp.bfloat16)                        # (D, D)
    bo = p["b_o"].reshape(1, D).astype(jnp.float32)
    return wq, wk, wv, bq, bk, bv, wo, bo


def multi_head_cross_attention(x, y, mask, params, num_heads, *, block_q=128):
    B, S, D = x.shape
    E = D // num_heads
    tq = S if S <= block_q else block_q
    assert S % tq == 0, "sequence length must divide evenly into query tiles"

    wq, wk, wv, bq, bk, bv, wo, bo = prepack_params(params, D, num_heads)
    x_b = x.astype(jnp.bfloat16)        # bf16 MXU operands in HBM (halves DMA)
    y_b = y.astype(jnp.bfloat16)
    mask = mask.astype(jnp.float32)

    grid = (B, S // tq)
    w_spec = pl.BlockSpec((D, D), lambda b, qi: (0, 0))         # resident weights
    b_spec = pl.BlockSpec((1, D), lambda b, qi: (0, 0))         # resident biases
    in_specs = [
        pl.BlockSpec((None, S, D), lambda b, qi: (b, 0, 0)),    # x: full K/V source per batch
        pl.BlockSpec((None, tq, D), lambda b, qi: (b, qi, 0)),  # y: query tile
        pl.BlockSpec((None, tq, S), lambda b, qi: (b, qi, 0)),  # mask tile
        w_spec, w_spec, w_spec,                                 # wq, wk, wv
        b_spec, b_spec, b_spec,                                 # bq, bk, bv
        w_spec, b_spec,                                         # wo, bo
    ]
    out_spec = pl.BlockSpec((None, tq, D), lambda b, qi: (b, qi, 0))

    kernel = make_mhca_kernel(num_heads, E)
    return pl.pallas_call(
        kernel,
        out_shape=jax.ShapeDtypeStruct((B, S, D), jnp.float32),
        grid_spec=pltpu.PrefetchScalarGridSpec(
            num_scalar_prefetch=0,
            grid=grid,
            in_specs=in_specs,
            out_specs=out_spec,
            scratch_shapes=[pltpu.VMEM((tq, D), jnp.bfloat16)],  # per-head value slab
        ),
        compiler_params=pltpu.CompilerParams(
            dimension_semantics=("parallel", "parallel"),
            vmem_limit_bytes=32 * 1024 * 1024,
        ),
    )(x_b, y_b, mask, wq, wk, wv, bq, bk, bv, wo, bo)


# ----------------------------- param init -----------------------------------
def init_params(key, d_model):
    def linear(k, fan_in, fan_out):
        k1, k2 = jax.random.split(k)
        bound = 1.0 / math.sqrt(fan_in)
        w = jax.random.uniform(k1, (fan_out, fan_in), jnp.float32, -bound, bound)  # nn.Linear layout
        b = jax.random.uniform(k2, (fan_out,), jnp.float32, -bound, bound)
        return w, b

    k1, k2, k3 = jax.random.split(key, 3)
    w_kv, b_kv = linear(k1, d_model, 2 * d_model)
    w_q, b_q = linear(k2, d_model, d_model)
    w_o, b_o = linear(k3, d_model, d_model)
    return {"w_kv": w_kv, "b_kv": b_kv, "w_q": w_q, "b_q": b_q, "w_o": w_o, "b_o": b_o}


# ---------------------- pure-JAX reference (PyTorch math) --------------------
def reference_mhca(x, y, mask, p, num_heads):
    B, S, D = x.shape
    E = D // num_heads
    kv = x @ p["w_kv"].T + p["b_kv"]                                   # (B,S,2D)
    q = y @ p["w_q"].T + p["b_q"]                                      # (B,S,D)
    kv = kv.reshape(B, S, num_heads, 2 * E).transpose(0, 2, 1, 3)      # (B,H,S,2E)
    q = q.reshape(B, S, num_heads, E).transpose(0, 2, 1, 3)            # (B,H,S,E)
    k, v = kv[..., :E], kv[..., E:]
    scaled = q @ jnp.swapaxes(k, -1, -2) / math.sqrt(E)                # (B,H,S,S)
    scaled = scaled + mask[:, None, :, :]                              # == permute(1,0,2,3)+mask trick
    attn = jax.nn.softmax(scaled, axis=-1)
    vals = attn @ v                                                    # (B,H,S,E)
    vals = vals.transpose(0, 2, 1, 3).reshape(B, S, D)
    return vals @ p["w_o"].T + p["b_o"]


# ---------------------------------- main -------------------------------------
if __name__ == "__main__":
    B, S, D, H = 2, 16, 64, 4        # small shapes consistent with the module (d_model % num_heads == 0)
    key = jax.random.PRNGKey(0)
    kx, ky, kp = jax.random.split(key, 3)
    x = jax.random.normal(kx, (B, S, D), jnp.float32)    # key/value source
    y = jax.random.normal(ky, (B, S, D), jnp.float32)    # query source
    params = init_params(kp, D)

    # additive padding-style mask (B,S,S): mask out last 3 key positions of batch 1
    valid_len = jnp.array([S, S - 3])
    pad = jnp.arange(S)[None, :] >= valid_len[:, None]                  # (B,S)
    mask = jnp.broadcast_to(jnp.where(pad[:, None, :], -1e9, 0.0), (B, S, S)).astype(jnp.float32)

    out = multi_head_cross_attention(x, y, mask, params, H)
    out = jax.block_until_ready(out)

    ref = reference_mhca(x, y, mask, params, H)
    assert out.shape == (B, S, D)
    # Tolerance sized for bf16 MXU operands (f32 accumulation) + approx reciprocal.
    err = float(jnp.max(jnp.abs(out - ref)))
    assert jnp.allclose(out, ref, atol=3e-2, rtol=3e-2), err
    print("KERNEL_OK")
</pallas_src>

<mosaic_0001>
module attributes {stable_mosaic.version = 11 : i64} {
  func.func @kernel(%arg0: i32, %arg1: i32, %arg2: memref<1x16x64xbf16, #tpu.memory_space<vmem>>, %arg3: memref<1x16x64xbf16, #tpu.memory_space<vmem>>, %arg4: memref<1x16x16xf32, #tpu.memory_space<vmem>>, %arg5: memref<64x64xbf16, #tpu.memory_space<vmem>>, %arg6: memref<64x64xbf16, #tpu.memory_space<vmem>>, %arg7: memref<64x64xbf16, #tpu.memory_space<vmem>>, %arg8: memref<1x64xf32, #tpu.memory_space<vmem>>, %arg9: memref<1x64xf32, #tpu.memory_space<vmem>>, %arg10: memref<1x64xf32, #tpu.memory_space<vmem>>, %arg11: memref<64x64xbf16, #tpu.memory_space<vmem>>, %arg12: memref<1x64xf32, #tpu.memory_space<vmem>>, %arg13: memref<1x16x64xf32, #tpu.memory_space<vmem>>, %arg14: memref<16x64xbf16, #tpu.memory_space<vmem>>) attributes {dimension_semantics = [#tpu.dimension_semantics<parallel>, #tpu.dimension_semantics<parallel>], iteration_bounds = array<i64: 2, 1>, scalar_prefetch = 0 : i64, scratch_operands = 1 : i64, tpu.core_type = #tpu.core_type<tc>, window_params = [{transform_indices = @transform_0, window_bounds = array<i64: 1, 16, 64>}, {transform_indices = @transform_1, window_bounds = array<i64: 1, 16, 64>}, {transform_indices = @transform_2, window_bounds = array<i64: 1, 16, 16>}, {pipeline_mode = #tpu.pipeline_mode<synchronous>, transform_indices = @transform_3, window_bounds = array<i64: 64, 64>}, {pipeline_mode = #tpu.pipeline_mode<synchronous>, transform_indices = @transform_4, window_bounds = array<i64: 64, 64>}, {pipeline_mode = #tpu.pipeline_mode<synchronous>, transform_indices = @transform_5, window_bounds = array<i64: 64, 64>}, {pipeline_mode = #tpu.pipeline_mode<synchronous>, transform_indices = @transform_6, window_bounds = array<i64: 1, 64>}, {pipeline_mode = #tpu.pipeline_mode<synchronous>, transform_indices = @transform_7, window_bounds = array<i64: 1, 64>}, {pipeline_mode = #tpu.pipeline_mode<synchronous>, transform_indices = @transform_8, window_bounds = array<i64: 1, 64>}, {pipeline_mode = #tpu.pipeline_mode<synchronous>, transform_indices = @transform_9, window_bounds = array<i64: 64, 64>}, {pipeline_mode = #tpu.pipeline_mode<synchronous>, transform_indices = @transform_10, window_bounds = array<i64: 1, 64>}, {transform_indices = @transform_11, window_bounds = array<i64: 1, 16, 64>}]} {
    %c0 = arith.constant 0 : index
    %c0_0 = arith.constant 0 : index
    %c0_1 = arith.constant 0 : index
    %0 = vector.load %arg3[%c0, %c0_0, %c0_1] : memref<1x16x64xbf16, #tpu.memory_space<vmem>>, vector<1x16x64xbf16>
    %1 = vector.shape_cast %0 : vector<1x16x64xbf16> to vector<16x64xbf16>
    %c0_2 = arith.constant 0 : index
    %c0_3 = arith.constant 0 : index
    %2 = vector.load %arg5[%c0_2, %c0_3] : memref<64x64xbf16, #tpu.memory_space<vmem>>, vector<64x64xbf16>
    %cst = arith.constant dense<0.000000e+00> : vector<16x64xf32>
    %3 = tpu.matmul %1, %2, %cst {dimension_numbers = #tpu.dot_dimension_numbers<[1], [0], [0], [1], [0, 0, 1, 1], [], []>} : vector<16x64xbf16>, vector<64x64xbf16>, vector<16x64xf32> -> vector<16x64xf32>
    %c0_4 = arith.constant 0 : index
    %c0_5 = arith.constant 0 : index
    %4 = vector.load %arg8[%c0_4, %c0_5] : memref<1x64xf32, #tpu.memory_space<vmem>>, vector<1x64xf32>
    %5 = vector.broadcast %4 : vector<1x64xf32> to vector<16x64xf32>
    %6 = arith.addf %3, %5 : vector<16x64xf32>
    %7 = arith.truncf %6 : vector<16x64xf32> to vector<16x64xbf16>
    %c0_6 = arith.constant 0 : index
    %c0_7 = arith.constant 0 : index
    %c0_8 = arith.constant 0 : index
    %8 = vector.load %arg2[%c0_6, %c0_7, %c0_8] : memref<1x16x64xbf16, #tpu.memory_space<vmem>>, vector<1x16x64xbf16>
    %9 = vector.shape_cast %8 : vector<1x16x64xbf16> to vector<16x64xbf16>
    %c0_9 = arith.constant 0 : index
    %c0_10 = arith.constant 0 : index
    %10 = vector.load %arg6[%c0_9, %c0_10] : memref<64x64xbf16, #tpu.memory_space<vmem>>, vector<64x64xbf16>
    %cst_11 = arith.constant dense<0.000000e+00> : vector<16x64xf32>
    %11 = tpu.matmul %9, %10, %cst_11 {dimension_numbers = #tpu.dot_dimension_numbers<[1], [0], [0], [1], [0, 0, 1, 1], [], []>} : vector<16x64xbf16>, vector<64x64xbf16>, vector<16x64xf32> -> vector<16x64xf32>
    %c0_12 = arith.constant 0 : index
    %c0_13 = arith.constant 0 : index
    %12 = vector.load %arg9[%c0_12, %c0_13] : memref<1x64xf32, #tpu.memory_space<vmem>>, vector<1x64xf32>
    %13 = vector.broadcast %12 : vector<1x64xf32> to vector<16x64xf32>
    %14 = arith.addf %11, %13 : vector<16x64xf32>
    %15 = arith.truncf %14 : vector<16x64xf32> to vector<16x64xbf16>
    %c0_14 = arith.constant 0 : index
    %c0_15 = arith.constant 0 : index
    %c0_16 = arith.constant 0 : index
    %16 = vector.load %arg2[%c0_14, %c0_15, %c0_16] : memref<1x16x64xbf16, #tpu.memory_space<vmem>>, vector<1x16x64xbf16>
    %17 = vector.shape_cast %16 : vector<1x16x64xbf16> to vector<16x64xbf16>
    %c0_17 = arith.constant 0 : index
    %c0_18 = arith.constant 0 : index
    %18 = vector.load %arg7[%c0_17, %c0_18] : memref<64x64xbf16, #tpu.memory_space<vmem>>, vector<64x64xbf16>
    %cst_19 = arith.constant dense<0.000000e+00> : vector<16x64xf32>
    %19 = tpu.matmul %17, %18, %cst_19 {dimension_numbers = #tpu.dot_dimension_numbers<[1], [0], [0], [1], [0, 0, 1, 1], [], []>} : vector<16x64xbf16>, vector<64x64xbf16>, vector<16x64xf32> -> vector<16x64xf32>
    %c0_20 = arith.constant 0 : index
    %c0_21 = arith.constant 0 : index
    %20 = vector.load %arg10[%c0_20, %c0_21] : memref<1x64xf32, #tpu.memory_space<vmem>>, vector<1x64xf32>
    %21 = vector.broadcast %20 : vector<1x64xf32> to vector<16x64xf32>
    %22 = arith.addf %19, %21 : vector<16x64xf32>
    %23 = arith.truncf %22 : vector<16x64xf32> to vector<16x64xbf16>
    %c0_22 = arith.constant 0 : index
    %c0_23 = arith.constant 0 : index
    %c0_24 = arith.constant 0 : index
    %24 = vector.load %arg4[%c0_22, %c0_23, %c0_24] : memref<1x16x16xf32, #tpu.memory_space<vmem>>, vector<1x16x16xf32>
    %25 = vector.shape_cast %24 : vector<1x16x16xf32> to vector<16x16xf32>
    %26 = vector.extract_strided_slice %7 {offsets = [0, 0], sizes = [16, 16], strides = [1, 1]} : vector<16x64xbf16> to vector<16x16xbf16>
    %27 = vector.extract_strided_slice %15 {offsets = [0, 0], sizes = [16, 16], strides = [1, 1]} : vector<16x64xbf16> to vector<16x16xbf16>
    %28 = vector.extract_strided_slice %23 {offsets = [0, 0], sizes = [16, 16], strides = [1, 1]} : vector<16x64xbf16> to vector<16x16xbf16>
    %cst_25 = arith.constant dense<0.000000e+00> : vector<16x16xf32>
    %29 = tpu.matmul %26, %27, %cst_25 {dimension_numbers = #tpu.dot_dimension_numbers<[1], [1], [0], [0], [0, 0, 1, 0], [], []>} : vector<16x16xbf16>, vector<16x16xbf16>, vector<16x16xf32> -> vector<16x16xf32>
    %30 = arith.addf %29, %25 : vector<16x16xf32>
    %cst_26 = arith.constant dense<0xFF800000> : vector<16xf32>
    %31 = vector.multi_reduction <maximumf>, %30, %cst_26 [1] : vector<16x16xf32> to vector<16xf32>
    %32 = vector.shape_cast %31 : vector<16xf32> to vector<16x1xf32>
    %33 = vector.broadcast %32 : vector<16x1xf32> to vector<16x16xf32>
    %34 = arith.subf %30, %33 : vector<16x16xf32>
    %35 = math.exp %34 : vector<16x16xf32>
    %cst_27 = arith.constant dense<0.000000e+00> : vector<16xf32>
    %36 = vector.multi_reduction <add>, %35, %cst_27 [1] : vector<16x16xf32> to vector<16xf32>
    %37 = vector.shape_cast %36 : vector<16xf32> to vector<16x1xf32>
    %38 = tpu.reciprocal %37 {approx = true} : vector<16x1xf32> -> vector<16x1xf32>
    %39 = vector.broadcast %38 : vector<16x1xf32> to vector<16x16xf32>
    %40 = arith.mulf %35, %39 : vector<16x16xf32>
    %41 = arith.truncf %40 : vector<16x16xf32> to vector<16x16xbf16>
    %cst_28 = arith.constant dense<0.000000e+00> : vector<16x16xf32>
    %42 = tpu.matmul %41, %28, %cst_28 {dimension_numbers = #tpu.dot_dimension_numbers<[1], [0], [0], [1], [0, 0, 1, 1], [], []>} : vector<16x16xbf16>, vector<16x16xbf16>, vector<16x16xf32> -> vector<16x16xf32>
    %43 = arith.truncf %42 : vector<16x16xf32> to vector<16x16xbf16>
    %c0_29 = arith.constant 0 : index
    %c0_30 = arith.constant 0 : index
    %44 = vector.load %arg14[%c0_29, %c0_30] : memref<16x64xbf16, #tpu.memory_space<vmem>>, vector<16x16xbf16>
    tpu.vector_store %arg14[%c0_29, %c0_30], %43 {strides = array<i32>} : memref<16x64xbf16, #tpu.memory_space<vmem>>, vector<16x16xbf16>,
    %45 = vector.extract_strided_slice %7 {offsets = [0, 16], sizes = [16, 16], strides = [1, 1]} : vector<16x64xbf16> to vector<16x16xbf16>
    %46 = vector.extract_strided_slice %15 {offsets = [0, 16], sizes = [16, 16], strides = [1, 1]} : vector<16x64xbf16> to vector<16x16xbf16>
    %47 = vector.extract_strided_slice %23 {offsets = [0, 16], sizes = [16, 16], strides = [1, 1]} : vector<16x64xbf16> to vector<16x16xbf16>
    %cst_31 = arith.constant dense<0.000000e+00> : vector<16x16xf32>
    %48 = tpu.matmul %45, %46, %cst_31 {dimension_numbers = #tpu.dot_dimension_numbers<[1], [1], [0], [0], [0, 0, 1, 0], [], []>} : vector<16x16xbf16>, vector<16x16xbf16>, vector<16x16xf32> -> vector<16x16xf32>
    %49 = arith.addf %48, %25 : vector<16x16xf32>
    %cst_32 = arith.constant dense<0xFF800000> : vector<16xf32>
    %50 = vector.multi_reduction <maximumf>, %49, %cst_32 [1] : vector<16x16xf32> to vector<16xf32>
    %51 = vector.shape_cast %50 : vector<16xf32> to vector<16x1xf32>
    %52 = vector.broadcast %51 : vector<16x1xf32> to vector<16x16xf32>
    %53 = arith.subf %49, %52 : vector<16x16xf32>
    %54 = math.exp %53 : vector<16x16xf32>
    %cst_33 = arith.constant dense<0.000000e+00> : vector<16xf32>
    %55 = vector.multi_reduction <add>, %54, %cst_33 [1] : vector<16x16xf32> to vector<16xf32>
    %56 = vector.shape_cast %55 : vector<16xf32> to vector<16x1xf32>
    %57 = tpu.reciprocal %56 {approx = true} : vector<16x1xf32> -> vector<16x1xf32>
    %58 = vector.broadcast %57 : vector<16x1xf32> to vector<16x16xf32>
    %59 = arith.mulf %54, %58 : vector<16x16xf32>
    %60 = arith.truncf %59 : vector<16x16xf32> to vector<16x16xbf16>
    %cst_34 = arith.constant dense<0.000000e+00> : vector<16x16xf32>
    %61 = tpu.matmul %60, %47, %cst_34 {dimension_numbers = #tpu.dot_dimension_numbers<[1], [0], [0], [1], [0, 0, 1, 1], [], []>} : vector<16x16xbf16>, vector<16x16xbf16>, vector<16x16xf32> -> vector<16x16xf32>
    %62 = arith.truncf %61 : vector<16x16xf32> to vector<16x16xbf16>
    %c0_35 = arith.constant 0 : index
    %c16 = arith.constant 16 : index
    %63 = vector.load %arg14[%c0_35, %c16] : memref<16x64xbf16, #tpu.memory_space<vmem>>, vector<16x16xbf16>
    tpu.vector_store %arg14[%c0_35, %c16], %62 {strides = array<i32>} : memref<16x64xbf16, #tpu.memory_space<vmem>>, vector<16x16xbf16>,
    %64 = vector.extract_strided_slice %7 {offsets = [0, 32], sizes = [16, 16], strides = [1, 1]} : vector<16x64xbf16> to vector<16x16xbf16>
    %65 = vector.extract_strided_slice %15 {offsets = [0, 32], sizes = [16, 16], strides = [1, 1]} : vector<16x64xbf16> to vector<16x16xbf16>
    %66 = vector.extract_strided_slice %23 {offsets = [0, 32], sizes = [16, 16], strides = [1, 1]} : vector<16x64xbf16> to vector<16x16xbf16>
    %cst_36 = arith.constant dense<0.000000e+00> : vector<16x16xf32>
    %67 = tpu.matmul %64, %65, %cst_36 {dimension_numbers = #tpu.dot_dimension_numbers<[1], [1], [0], [0], [0, 0, 1, 0], [], []>} : vector<16x16xbf16>, vector<16x16xbf16>, vector<16x16xf32> -> vector<16x16xf32>
    %68 = arith.addf %67, %25 : vector<16x16xf32>
    %cst_37 = arith.constant dense<0xFF800000> : vector<16xf32>
    %69 = vector.multi_reduction <maximumf>, %68, %cst_37 [1] : vector<16x16xf32> to vector<16xf32>
    %70 = vector.shape_cast %69 : vector<16xf32> to vector<16x1xf32>
    %71 = vector.broadcast %70 : vector<16x1xf32> to vector<16x16xf32>
    %72 = arith.subf %68, %71 : vector<16x16xf32>
    %73 = math.exp %72 : vector<16x16xf32>
    %cst_38 = arith.constant dense<0.000000e+00> : vector<16xf32>
    %74 = vector.multi_reduction <add>, %73, %cst_38 [1] : vector<16x16xf32> to vector<16xf32>
    %75 = vector.shape_cast %74 : vector<16xf32> to vector<16x1xf32>
    %76 = tpu.reciprocal %75 {approx = true} : vector<16x1xf32> -> vector<16x1xf32>
    %77 = vector.broadcast %76 : vector<16x1xf32> to vector<16x16xf32>
    %78 = arith.mulf %73, %77 : vector<16x16xf32>
    %79 = arith.truncf %78 : vector<16x16xf32> to vector<16x16xbf16>
    %cst_39 = arith.constant dense<0.000000e+00> : vector<16x16xf32>
    %80 = tpu.matmul %79, %66, %cst_39 {dimension_numbers = #tpu.dot_dimension_numbers<[1], [0], [0], [1], [0, 0, 1, 1], [], []>} : vector<16x16xbf16>, vector<16x16xbf16>, vector<16x16xf32> -> vector<16x16xf32>
    %81 = arith.truncf %80 : vector<16x16xf32> to vector<16x16xbf16>
    %c0_40 = arith.constant 0 : index
    %c32 = arith.constant 32 : index
    %82 = vector.load %arg14[%c0_40, %c32] : memref<16x64xbf16, #tpu.memory_space<vmem>>, vector<16x16xbf16>
    tpu.vector_store %arg14[%c0_40, %c32], %81 {strides = array<i32>} : memref<16x64xbf16, #tpu.memory_space<vmem>>, vector<16x16xbf16>,
    %83 = vector.extract_strided_slice %7 {offsets = [0, 48], sizes = [16, 16], strides = [1, 1]} : vector<16x64xbf16> to vector<16x16xbf16>
    %84 = vector.extract_strided_slice %15 {offsets = [0, 48], sizes = [16, 16], strides = [1, 1]} : vector<16x64xbf16> to vector<16x16xbf16>
    %85 = vector.extract_strided_slice %23 {offsets = [0, 48], sizes = [16, 16], strides = [1, 1]} : vector<16x64xbf16> to vector<16x16xbf16>
    %cst_41 = arith.constant dense<0.000000e+00> : vector<16x16xf32>
    %86 = tpu.matmul %83, %84, %cst_41 {dimension_numbers = #tpu.dot_dimension_numbers<[1], [1], [0], [0], [0, 0, 1, 0], [], []>} : vector<16x16xbf16>, vector<16x16xbf16>, vector<16x16xf32> -> vector<16x16xf32>
    %87 = arith.addf %86, %25 : vector<16x16xf32>
    %cst_42 = arith.constant dense<0xFF800000> : vector<16xf32>
    %88 = vector.multi_reduction <maximumf>, %87, %cst_42 [1] : vector<16x16xf32> to vector<16xf32>
    %89 = vector.shape_cast %88 : vector<16xf32> to vector<16x1xf32>
    %90 = vector.broadcast %89 : vector<16x1xf32> to vector<16x16xf32>
    %91 = arith.subf %87, %90 : vector<16x16xf32>
    %92 = math.exp %91 : vector<16x16xf32>
    %cst_43 = arith.constant dense<0.000000e+00> : vector<16xf32>
    %93 = vector.multi_reduction <add>, %92, %cst_43 [1] : vector<16x16xf32> to vector<16xf32>
    %94 = vector.shape_cast %93 : vector<16xf32> to vector<16x1xf32>
    %95 = tpu.reciprocal %94 {approx = true} : vector<16x1xf32> -> vector<16x1xf32>
    %96 = vector.broadcast %95 : vector<16x1xf32> to vector<16x16xf32>
    %97 = arith.mulf %92, %96 : vector<16x16xf32>
    %98 = arith.truncf %97 : vector<16x16xf32> to vector<16x16xbf16>
    %cst_44 = arith.constant dense<0.000000e+00> : vector<16x16xf32>
    %99 = tpu.matmul %98, %85, %cst_44 {dimension_numbers = #tpu.dot_dimension_numbers<[1], [0], [0], [1], [0, 0, 1, 1], [], []>} : vector<16x16xbf16>, vector<16x16xbf16>, vector<16x16xf32> -> vector<16x16xf32>
    %100 = arith.truncf %99 : vector<16x16xf32> to vector<16x16xbf16>
    %c0_45 = arith.constant 0 : index
    %c48 = arith.constant 48 : index
    %101 = vector.load %arg14[%c0_45, %c48] : memref<16x64xbf16, #tpu.memory_space<vmem>>, vector<16x16xbf16>
    tpu.vector_store %arg14[%c0_45, %c48], %100 {strides = array<i32>} : memref<16x64xbf16, #tpu.memory_space<vmem>>, vector<16x16xbf16>,
    %c0_46 = arith.constant 0 : index
    %c0_47 = arith.constant 0 : index
    %102 = vector.load %arg14[%c0_46, %c0_47] : memref<16x64xbf16, #tpu.memory_space<vmem>>, vector<16x64xbf16>
    %c0_48 = arith.constant 0 : index
    %c0_49 = arith.constant 0 : index
    %103 = vector.load %arg11[%c0_48, %c0_49] : memref<64x64xbf16, #tpu.memory_space<vmem>>, vector<64x64xbf16>
    %cst_50 = arith.constant dense<0.000000e+00> : vector<16x64xf32>
    %104 = tpu.matmul %102, %103, %cst_50 {dimension_numbers = #tpu.dot_dimension_numbers<[1], [0], [0], [1], [0, 0, 1, 1], [], []>} : vector<16x64xbf16>, vector<64x64xbf16>, vector<16x64xf32> -> vector<16x64xf32>
    %c0_51 = arith.constant 0 : index
    %c0_52 = arith.constant 0 : index
    %105 = vector.load %arg12[%c0_51, %c0_52] : memref<1x64xf32, #tpu.memory_space<vmem>>, vector<1x64xf32>
    %106 = vector.broadcast %105 : vector<1x64xf32> to vector<16x64xf32>
    %107 = arith.addf %104, %106 : vector<16x64xf32>
    %c0_53 = arith.constant 0 : index
    %c0_54 = arith.constant 0 : index
    %c0_55 = arith.constant 0 : index
    %108 = vector.load %arg13[%c0_53, %c0_54, %c0_55] : memref<1x16x64xf32, #tpu.memory_space<vmem>>, vector<1x16x64xf32>
    %109 = vector.shape_cast %108 : vector<1x16x64xf32> to vector<16x64xf32>
    %110 = vector.shape_cast %107 : vector<16x64xf32> to vector<1x16x64xf32>
    tpu.vector_store %arg13[%c0_53, %c0_54, %c0_55], %110 {strides = array<i32>} : memref<1x16x64xf32, #tpu.memory_space<vmem>>, vector<1x16x64xf32>,
    return
  }
  func.func @transform_0(%arg0: i32, %arg1: i32) -> (i32, i32, i32) {
    %c0_i32 = arith.constant 0 : i32
    %c0_i32_0 = arith.constant 0 : i32
    %c0_i32_1 = arith.constant 0 : i32
    return %arg0, %c0_i32, %c0_i32_0 : i32, i32, i32
  }
  func.func @transform_1(%arg0: i32, %arg1: i32) -> (i32, i32, i32) {
    %c0_i32 = arith.constant 0 : i32
    %c0_i32_0 = arith.constant 0 : i32
    return %arg0, %arg1, %c0_i32 : i32, i32, i32
  }
  func.func @transform_2(%arg0: i32, %arg1: i32) -> (i32, i32, i32) {
    %c0_i32 = arith.constant 0 : i32
    %c0_i32_0 = arith.constant 0 : i32
    return %arg0, %arg1, %c0_i32 : i32, i32, i32
  }
  func.func @transform_3(%arg0: i32, %arg1: i32) -> (i32, i32) {
    %c0_i32 = arith.constant 0 : i32
    %c0_i32_0 = arith.constant 0 : i32
    %c0_i32_1 = arith.constant 0 : i32
    return %c0_i32, %c0_i32_0 : i32, i32
  }
  func.func @transform_4(%arg0: i32, %arg1: i32) -> (i32, i32) {
    %c0_i32 = arith.constant 0 : i32
    %c0_i32_0 = arith.constant 0 : i32
    %c0_i32_1 = arith.constant 0 : i32
    return %c0_i32, %c0_i32_0 : i32, i32
  }
  func.func @transform_5(%arg0: i32, %arg1: i32) -> (i32, i32) {
    %c0_i32 = arith.constant 0 : i32
    %c0_i32_0 = arith.constant 0 : i32
    %c0_i32_1 = arith.constant 0 : i32
    return %c0_i32, %c0_i32_0 : i32, i32
  }
  func.func @transform_6(%arg0: i32, %arg1: i32) -> (i32, i32) {
    %c0_i32 = arith.constant 0 : i32
    %c0_i32_0 = arith.constant 0 : i32
    %c0_i32_1 = arith.constant 0 : i32
    return %c0_i32, %c0_i32_0 : i32, i32
  }
  func.func @transform_7(%arg0: i32, %arg1: i32) -> (i32, i32) {
    %c0_i32 = arith.constant 0 : i32
    %c0_i32_0 = arith.constant 0 : i32
    %c0_i32_1 = arith.constant 0 : i32
    return %c0_i32, %c0_i32_0 : i32, i32
  }
  func.func @transform_8(%arg0: i32, %arg1: i32) -> (i32, i32) {
    %c0_i32 = arith.constant 0 : i32
    %c0_i32_0 = arith.constant 0 : i32
    %c0_i32_1 = arith.constant 0 : i32
    return %c0_i32, %c0_i32_0 : i32, i32
  }
  func.func @transform_9(%arg0: i32, %arg1: i32) -> (i32, i32) {
    %c0_i32 = arith.constant 0 : i32
    %c0_i32_0 = arith.constant 0 : i32
    %c0_i32_1 = arith.constant 0 : i32
    return %c0_i32, %c0_i32_0 : i32, i32
  }
  func.func @transform_10(%arg0: i32, %arg1: i32) -> (i32, i32) {
    %c0_i32 = arith.constant 0 : i32
    %c0_i32_0 = arith.constant 0 : i32
    %c0_i32_1 = arith.constant 0 : i32
    return %c0_i32, %c0_i32_0 : i32, i32
  }
  func.func @transform_11(%arg0: i32, %arg1: i32) -> (i32, i32, i32) {
    %c0_i32 = arith.constant 0 : i32
    %c0_i32_0 = arith.constant 0 : i32
    return %arg0, %arg1, %c0_i32 : i32, i32, i32
  }
}

</mosaic_0001>

<bundles_post_ra>
// kernel: tpu_custom_call.1
= control target key start
LH: loop header
LB: loop body
LE: loop exit
PB: predicated region body
PF: predicated region fallthrough
CT: control target
= control target key end

     0   :  { %s2910_s0 = inlined_call_operand.hbm [shape: bf16[2,16,64], index: 0, kind: input, shape index: {}]   ;;  %s2911_s1 = inlined_call_operand.hbm [shape: bf16[2,16,64], index: 1, kind: input, shape index: {}]   ;;  %s2912_s2 = inlined_call_operand.hbm [shape: f32[2,16,16], index: 2, kind: input, shape index: {}]   ;;  %s2913_s3 = inlined_call_operand.hbm [shape: bf16[64,64], index: 3, kind: input, shape index: {}]   ;;  %s2914_s4 = inlined_call_operand.hbm [shape: bf16[64,64], index: 4, kind: input, shape index: {}]   ;;  %s2915_s5 = inlined_call_operand.hbm [shape: bf16[64,64], index: 5, kind: input, shape index: {}]   ;;  %s2916_s6 = inlined_call_operand.vmem [shape: f32[1,64], index: 6, kind: input, shape index: {}]   ;;  %s2917_s7 = inlined_call_operand.vmem [shape: f32[1,64], index: 7, kind: input, shape index: {}]   ;;  %s2918_s8 = inlined_call_operand.hbm [shape: f32[1,64], index: 8, kind: input, shape index: {}]   ;;  %s2919_s9 = inlined_call_operand.vmem [shape: bf16[64,64], index: 9, kind: input, shape index: {}]   ;;  %s2920_s10 = inlined_call_operand.vmem [shape: f32[1,64], index: 10, kind: input, shape index: {}]   ;;  %s2921_s11 = inlined_call_operand.hbm [shape: f32[2,16,64], index: 11, kind: output, shape index: {}]  }
   0x1   :  { %2950 = sst [smem:[#allocation29_spill]] %s2911_s1 }
   0x2   :  { %2951 = sst [smem:[#allocation30_spill]] %s2913_s3 }
   0x3   :  { %2952 = sst [smem:[#allocation31_spill]] %s2915_s5 }
   0x4   :  { %2953 = sst [smem:[#allocation32_spill]] %s2916_s6 }
   0x5   :  { %2954 = sst [smem:[#allocation33_spill]] %s2919_s9 }
   0x6   :  { %2955 = sst [smem:[#allocation34_spill]] %s2920_s10 }
   0x7   :  { %2956 = sst [smem:[#allocation35_spill]] %s2921_s11 }
   0x8   :  { %16 = vsyncpa [#allocation4], 0 }
   0x9   :  { %18 = vsyncpa [#allocation4 + $0x1], 0 }
   0xa   :  { %19 = vsyncpa [#allocation7], 0 }
   0xb   :  { %21 = vsyncpa [#allocation7 + $0x1], 0 }
   0xc   :  { %22 = vsyncpa [#allocation10], 0 }
   0xd   :  { %23 = vsyncpa [#allocation13], 0 }
   0xe   :  { %24 = vsyncpa [#allocation5], 0 }
   0xf   :  { %26 = vsyncpa [#allocation5 + $0x1], 0  ;;  %s2365_s17 = smov 0   ;;  %s2367_s18 = smov 0  }
  0x10   :  { %s2369_s19 = smov 0   ;;  %s2371_s20 = smov 0  }
  0x11   :  { %s2373_s21 = smov 0   ;;  %s2375_s22 = smov 0  }
  0x12 LB: > { %2957 = sst [smem:[#allocation21_spill]] %s2261_s17  ;;  %s2396_s23 = sadd.s32 4294967295, %s2281_s22   ;;  %s2281_s22 = sphi %s2375_s22, %s32_s22   ;;  %s2277_s21 = sphi %s2373_s21, %s3009_s21   ;;  %s2273_s20 = sphi %s2371_s20, %s3008_s20   ;;  %s2269_s19 = sphi %s2369_s19, %s3004_s19   ;;  %s2265_s18 = sphi %s2367_s18, %s3007_s18   ;;  %s2261_s17 = sphi %s2365_s17, %s3006_s17  }
  0x13   : > { %2958 = sst [smem:[#allocation22_spill]] %s2269_s19  ;;  %s1608_s24 = sadd.s32 4294967294, %s2281_s22  }
  0x14   : > { %2959 = sst [smem:[#allocation23_spill]] %s2273_s20  ;;  %p64_p0 = scmp.ne.s32.totalorder %s2265_s18, %s2261_s17 }
  0x15   : > { %2960 = sst [smem:[#allocation24_spill]] %s2281_s22  ;;  %p2924_p1 = scmp.eq.s32.totalorder %s2396_s23, 0 }
  0x16   : > { %p320_p3 = scmp.eq.s32.totalorder %s1608_s24, 1  ;;  %p1609_p5 = scmp.ge.s32.totalorder %s2281_s22, 1 }
  0x17   : > { %p2405_p4 = por %p2924_p1, %p64_p0  ;;  %p327_p7 = scmp.lt.s32.totalorder %s2281_s22, 3 }
  0x18   : > { %p2410_p6 = por %p320_p3, %p64_p0  ;;  %s2283_s28 = smov [#allocation9]  }
  0x19   : > { %s2961_s25 = scalar_select %p2405_p4, 1, 0 }
  0x1a   : > { %s2962_s26 = scalar_select %p2410_p6, 1, 0 }
  0x1b   : > { %p2415_p8 = pnand %p1609_p5, %p327_p7  ;;  %s339_s29 = sshll.u32 %s2283_s28, 4  ;;  %s2419_s29 = int_to_ptr.vmem [resolvable:$true] %s339_s29 }
  0x1c   : > { %2963 = sst [smem:[#allocation25_spill]] %s2962_s26  ;;  %s2284_s12 = smov [#allocation12]  }
  0x1d   : > { %s2964_s27 = scalar_select %p2415_p8, 1, 0 }
  0x1e   : > { %p1832_p9 = pneg %p2415_p8  ;;  %s365_s13 = sshll.u32 %s2284_s12, 4  ;;  %s2430_s13 = int_to_ptr.vmem [resolvable:$true] %s365_s13 }
  0x1f   : > { %s2966_s3 = sld [smem:[#allocation30_spill]] }
  0x20   : > { %p2426_p11 = pnand %p1832_p9, %p2924_p1 }
  0x22   : > { %s2965_s30 = scalar_select %p2426_p11, 1, 0 }
  0x23   : > { %p2440_p13 = pneg %p2426_p11 }
  0x25   : > { %s1985_s16 = scalar_lea.hbm %s2966_s3, 512 }
  0x26   : > { %p1986_p12 = scmp.ne.s32.totalorder %s2966_s3, %s1985_s16  ;;  %p1992_p5 = scmp.lt.u32.totalorder %s1985_s16, %s2966_s3 }
  0x27   : > { %s2967_s26 = scalar_select %p2440_p13, 1, 0 }
  0x28   : > { %p1988_p0 = pnand %p2440_p13, %p1986_p12 }
  0x2a   : > { %p1989_p3 = pneg %p1988_p0 }
  0x2c   : > { %p1994_p7 = pnand %p1992_p5, %p1989_p3 }
  0x2e   : > { %1997 = shalt.err (!%p1994_p7)
}
  0x2f   : > { %s1998_s14 = scalar_lea.vmem %s2419_s29, 512  ;;  %p2006_p2 = scmp.lt.s32.totalorder %s2419_s29, %s2419_s29 }
  0x30   : > { %p1999_p9 = scmp.ne.s32.totalorder %s2419_s29, %s1998_s14  ;;  %p2007_p6 = scmp.lt.s32.totalorder %s1998_s14, %s1998_s14 }
  0x32   : > { %p2001_p10 = pnand %p1999_p9, %p2440_p13  ;;  %p2008_p12 = por %p2007_p6, %p2006_p2 }
  0x34   : > { %p2002_p1 = pneg %p2001_p10 }
  0x36   : > { %p2009_p0 = pnand %p2008_p12, %p2002_p1 }
  0x38   : > { %2012 = shalt.err (!%p2009_p0)
}
  0x39   : > { %s2927_s15 = smov 64   ;;  %s2929_s17 = smov 4  }
  0x3a   : > { %1835 = dma.hbm_to_vmem [thread:$0]  (!%p2426_p11), %s2966_s3, 512, %s2419_s29, [#allocation10], %s2927_s15, %s2927_s15, %s2929_s17  }
  0x3b   : > { %s2968_s5 = sld [smem:[#allocation31_spill]] }
  0x41   : > { %s2013_s14 = scalar_lea.hbm %s2968_s5, 512 }
  0x42   : > { %p2014_p1 = scmp.ne.s32.totalorder %s2968_s5, %s2013_s14  ;;  %p2020_p10 = scmp.lt.u32.totalorder %s2013_s14, %s2968_s5 }
  0x44   : > { %p2016_p2 = pnand %p2014_p1, %p2440_p13 }
  0x46   : > { %p2017_p6 = pneg %p2016_p2 }
  0x48   : > { %p2022_p3 = pnand %p2020_p10, %p2017_p6 }
  0x4a   : > { %2025 = shalt.err (!%p2022_p3)
}
  0x4b   : > { %s2026_s29 = scalar_lea.vmem %s2430_s13, 512  ;;  %p2034_p12 = scmp.lt.s32.totalorder %s2430_s13, %s2430_s13 }
  0x4c   : > { %p2027_p5 = scmp.ne.s32.totalorder %s2430_s13, %s2026_s29  ;;  %p2035_p0 = scmp.lt.s32.totalorder %s2026_s29, %s2026_s29 }
  0x4e   : > { %p2029_p7 = pnand %p2027_p5, %p2440_p13  ;;  %p2036_p1 = por %p2035_p0, %p2034_p12 }
  0x50   : > { %p2030_p9 = pneg %p2029_p7 }
  0x52   : > { %p2037_p2 = pnand %p2036_p1, %p2030_p9 }
  0x54   : > { %2040 = shalt.err (!%p2037_p2)
}
  0x55   : > { %1841 = dma.hbm_to_vmem [thread:$0]  (!%p2426_p11), %s2968_s5, 512, %s2430_s13, [#allocation13], %s2927_s15, %s2927_s15, %s2929_s17  }
  0x56   : > { %s44_s11 = sadd.s32 1, %s2277_s21  ;;  %s51_s20 = sadd.s32 1, %s2269_s19 }
  0x57   : > { %p46_p6 = scmp.ge.s32.totalorder %s44_s11, 2  ;;  %p58_p10 = scmp.ne.s32.totalorder %s2269_s19, %s2265_s18 }
  0x58   : > { %p59_p3 = scmp.eq.s32.totalorder %s2281_s22, 0  ;;  %p1863_p5 = scmp.lt.s32.totalorder %s2281_s22, 2 }
  0x59   : > { %s3011_s11 = smov (%p46_p6, %s44_s11), 0  ;;  %p2970_p9 = scmp.eq.s32.totalorder %s2396_s23, 1 }
  0x5a   : > { %2969 = sst [smem:[#allocation26_spill]] %s3011_s11  ;;  %p60_p7 = por %p59_p3, %p58_p10 }
  0x5b   : > { %p2500_p12 = por %p2970_p9, %p58_p10  ;;  %s48_s24 = ssub.s32 %s2277_s21, %s3011_s11 }
  0x5c   : > { %s2507_s13 = sand.u32 1, %s2269_s19   ;;  %p49_p0 = scmp.eq.s32.totalorder %s48_s24, 0 }
  0x5d   : > { %s2971_s16 = scalar_select %p2500_p12, 1, 0 }
  0x5e   : > { %s2932_s28 = sshll.u32 %s2507_s13, 3  ;;  %s2933_s12 = sshll.u32 %s2277_s21, 7 }
  0x5f   : > { %2972 = sst [smem:[#allocation27_spill]] %s2971_s16  ;;  %p2511_p1 = pnand %p1863_p5, %p60_p7 }
  0x60   : > { %s2516_s29 = scalar_select %p49_p0, %s2269_s19, %s51_s20  }
  0x61   : > { %s2973_s14 = scalar_select %p2511_p1, 1, 0 }
  0x62   : > { %2974 = sst [smem:[#allocation28_spill]] %s2516_s29  ;;  %s423_s9 = sand.u32 1, %s2281_s22  }
  0x63   : > { %s2975_s1 = sld [smem:[#allocation29_spill]]  ;;  %s427_s24 = scalar_lea.vmem [#allocation6], %s2932_s28 }
  0x64   : > { %s436_s3 = sshll.u32 %s427_s24, 4  ;;  %s2530_s5 = scalar_lea.sflag [#allocation7], %s423_s9  ;;  %s2528_s3 = int_to_ptr.vmem [resolvable:$true] %s436_s3 }
  0x65   : > { %p2536_p6 = pneg %p2511_p1 }
  0x67   : > { %s2976_s11 = scalar_select %p2536_p6, 1, 0 }
  0x69   : > { %s2524_s17 = scalar_lea.hbm %s2975_s1, %s2933_s12  ;;  %s2046_s28 = scalar_lea.hbm %s2975_s1, 256 }
  0x6a   : > { %s2041_s20 = scalar_lea.hbm %s2524_s17, 128  ;;  %p2047_p5 = scmp.lt.u32.totalorder %s2524_s17, %s2975_s1 }
  0x6b   : > { %p2042_p2 = scmp.ne.s32.totalorder %s2524_s17, %s2041_s20  ;;  %p2048_p7 = scmp.lt.u32.totalorder %s2046_s28, %s2041_s20 }
  0x6c   : > { %p2050_p0 = scmp.lt.u32.totalorder %s2041_s20, %s2524_s17 }
  0x6d   : > { %p2044_p10 = pnand %p2536_p6, %p2042_p2  ;;  %p2049_p9 = por %p2048_p7, %p2047_p5 }
  0x6f   : > { %p2045_p3 = pneg %p2044_p10  ;;  %p2051_p12 = por %p2050_p0, %p2049_p9 }
  0x71   : > { %p2052_p4 = pnand %p2051_p12, %p2045_p3 }
  0x73   : > { %2055 = shalt.err (!%p2052_p4)
}
  0x74   : > { %s2056_s9 = scalar_lea.vmem %s2528_s3, 128  ;;  %s2287_s15 = smov [#allocation6]  }
  0x75   : > { %p2057_p2 = scmp.ne.s32.totalorder %s2528_s3, %s2056_s9  ;;  %s2061_s10 = sshll.u32 %s2287_s15, 4  ;;  %s2062_s10 = int_to_ptr.vmem [resolvable:$false] %s2061_s10 }
  0x76   : > { %s2063_s12 = scalar_lea.vmem %s2062_s10, 256  ;;  %p2064_p11 = scmp.lt.s32.totalorder %s2528_s3, %s2062_s10 }
  0x77   : > { %p2059_p10 = pnand %p2057_p2, %p2536_p6  ;;  %p2065_p13 = scmp.lt.s32.totalorder %s2063_s12, %s2056_s9 }
  0x79   : > { %p2060_p8 = pneg %p2059_p10  ;;  %p2066_p5 = por %p2065_p13, %p2064_p11 }
  0x7b   : > { %p2067_p7 = pnand %p2066_p5, %p2060_p8 }
  0x7d   : > { %2070 = shalt.err (!%p2067_p7)
}
  0x7e   : > { %s2977_s28 = smov 4   ;;  %s2978_s20 = smov 64  }
  0x7f   : > { %1851 = dma.hbm_to_vmem [thread:$0]  (!%p2511_p1), %s2524_s17, 128, %s2528_s3, %s2530_s5, %s2978_s20, %s2978_s20, %s2977_s28  }
  0x80   : > { %s2288_s24 = smov [#allocation11]   ;;  %s2289_s15 = smov [#allocation14]  }
  0x81   : > { %s352_s1 = sshll.u32 %s2288_s24, 4  ;;  %s385_s29 = sshll.u32 %s2289_s15, 4  ;;  %s353_s1 = int_to_ptr.vmem [resolvable:$true] %s352_s1  ;;  %s386_s29 = int_to_ptr.vmem [resolvable:$true] %s385_s29 }
  0x82   : > { %s2071_s12 = scalar_lea.hbm %s2914_s4, 512  ;;  %p2979_p8 = scmp.ne.s32.totalorder %s2967_s26, 0 }
  0x83   : > { %p2072_p4 = scmp.ne.s32.totalorder %s2914_s4, %s2071_s12  ;;  %p2078_p12 = scmp.lt.u32.totalorder %s2071_s12, %s2914_s4 }
  0x85   : > { %p2074_p11 = pnand %p2072_p4, %p2979_p8 }
  0x87   : > { %p2075_p13 = pneg %p2074_p11 }
  0x89   : > { %p2080_p3 = pnand %p2078_p12, %p2075_p13 }
  0x8b   : > { %2083 = shalt.err (!%p2080_p3)
}
  0x8c   : > { %s2084_s3 = scalar_lea.vmem %s353_s1, 512  ;;  %p2092_p10 = scmp.lt.s32.totalorder %s353_s1, %s353_s1 }
  0x8d   : > { %p2085_p9 = scmp.ne.s32.totalorder %s353_s1, %s2084_s3  ;;  %p2093_p5 = scmp.lt.s32.totalorder %s2084_s3, %s2084_s3 }
  0x8f   : > { %p2087_p0 = pnand %p2085_p9, %p2979_p8  ;;  %p2094_p7 = por %p2093_p5, %p2092_p10 }
  0x91   : > { %p2088_p2 = pneg %p2087_p0 }
  0x93   : > { %p2095_p1 = pnand %p2094_p7, %p2088_p2 }
  0x95   : > { %2098 = shalt.err (!%p2095_p1)
}
  0x96   : > { %p2980_p4 = scmp.ne.s32.totalorder %s2965_s30, 0  ;;  %s2099_s16 = scalar_lea.hbm %s2918_s8, 16 }
  0x97   : > { %p2100_p11 = scmp.ne.s32.totalorder %s2918_s8, %s2099_s16  ;;  %p2106_p12 = scmp.lt.u32.totalorder %s2099_s16, %s2918_s8 }
  0x98   : > { %1838 = dma.hbm_to_vmem [thread:$0]  (!%p2980_p4), %s2914_s4, 512, %s353_s1, [#allocation10], %s2978_s20, %s2978_s20, %s2977_s28  }
  0x99   : > { %p2102_p1 = pnand %p2100_p11, %p2979_p8 }
  0x9b   : > { %p2103_p13 = pneg %p2102_p1 }
  0x9d   : > { %p2108_p3 = pnand %p2106_p12, %p2103_p13 }
  0x9f   : > { %2111 = shalt.err (!%p2108_p3)
}
  0xa0   : > { %s2112_s12 = scalar_lea.vmem %s386_s29, 16  ;;  %s2119_s1 = scalar_lea.vmem %s386_s29, 32 }
  0xa1   : > { %p2113_p9 = scmp.ne.s32.totalorder %s386_s29, %s2112_s12  ;;  %p2120_p10 = scmp.lt.s32.totalorder %s386_s29, %s386_s29 }
  0xa2   : > { %p2121_p5 = scmp.lt.s32.totalorder %s2119_s1, %s2112_s12 }
  0xa3   : > { %p2115_p0 = pnand %p2113_p9, %p2979_p8 }
  0xa4   : > { %p2122_p7 = por %p2121_p5, %p2120_p10 }
  0xa5   : > { %p2116_p2 = pneg %p2115_p0 }
  0xa7   : > { %p2123_p6 = pnand %p2122_p7, %p2116_p2 }
  0xa9   : > { %2126 = shalt.err (!%p2123_p6)
}
  0xaa   : > { %1844 = dma.hbm_to_vmem [thread:$0]  (!%p2980_p4), %s2918_s8, 16, %s386_s29, [#allocation13]  }
  0xab   : > { %s2981_s26 = sshll.u32 %s2277_s21, 7  ;;  %s2982_s16 = sshll.u32 %s2507_s13, 3 }
  0xac   : > { %s2607_s17 = scalar_lea.hbm %s2910_s0, %s2981_s26  ;;  %s406_s30 = scalar_lea.vmem [#allocation3], %s2982_s16 }
  0xad   : > { %s413_s24 = sshll.u32 %s406_s30, 4  ;;  %s1621_s15 = sshll.u32 %s2507_s13, 4  ;;  %s2612_s24 = int_to_ptr.vmem [resolvable:$true] %s413_s24 }
  0xae   : > { %s403_s10 = scalar_lea.sflag [#allocation4], %s2507_s13  ;;  %s2127_s9 = scalar_lea.hbm %s2607_s17, 128 }
  0xaf   : > { %p2128_p6 = scmp.ne.s32.totalorder %s2607_s17, %s2127_s9  ;;  %p2983_p8 = scmp.ne.s32.totalorder %s2976_s11, 0 }
  0xb0   : > { %s2132_s1 = scalar_lea.hbm %s2910_s0, 256  ;;  %p2133_p1 = scmp.lt.u32.totalorder %s2607_s17, %s2910_s0 }
  0xb1   : > { %p2130_p4 = pnand %p2128_p6, %p2983_p8  ;;  %p2134_p13 = scmp.lt.u32.totalorder %s2132_s1, %s2127_s9 }
  0xb2   : > { %p2136_p3 = scmp.lt.u32.totalorder %s2127_s9, %s2607_s17 }
  0xb3   : > { %p2131_p11 = pneg %p2130_p4  ;;  %p2135_p12 = por %p2134_p13, %p2133_p1 }
  0xb5   : > { %p2137_p9 = por %p2136_p3, %p2135_p12 }
  0xb7   : > { %p2138_p0 = pnand %p2137_p9, %p2131_p11 }
  0xb9   : > { %2141 = shalt.err (!%p2138_p0)
}
  0xba   : > { %s2142_s26 = scalar_lea.vmem %s2612_s24, 128  ;;  %s2290_s19 = smov [#allocation3]  }
  0xbb   : > { %p2143_p2 = scmp.ne.s32.totalorder %s2612_s24, %s2142_s26  ;;  %s2147_s22 = sshll.u32 %s2290_s19, 4  ;;  %s2148_s22 = int_to_ptr.vmem [resolvable:$false] %s2147_s22 }
  0xbc   : > { %s2149_s16 = scalar_lea.vmem %s2148_s22, 256  ;;  %p2150_p7 = scmp.lt.s32.totalorder %s2612_s24, %s2148_s22 }
  0xbd   : > { %p2145_p10 = pnand %p2143_p2, %p2983_p8  ;;  %p2151_p6 = scmp.lt.s32.totalorder %s2149_s16, %s2142_s26 }
  0xbf   : > { %p2146_p5 = pneg %p2145_p10  ;;  %p2152_p4 = por %p2151_p6, %p2150_p7 }
  0xc1   : > { %p2153_p1 = pnand %p2152_p4, %p2146_p5 }
  0xc3   : > { %2156 = shalt.err (!%p2153_p1)
}
  0xc4   : > { %p2984_p11 = scmp.ne.s32.totalorder %s2973_s14, 0  ;;  %s1674_s30 = sshll.u32 %s2277_s21, 8 }
  0xc5   : > { %s450_s9 = scalar_lea.vmem [#allocation8], %s1621_s15  ;;  %s2647_s3 = scalar_lea.hbm %s2912_s2, %s1674_s30 }
  0xc6   : > { %1848 = dma.hbm_to_vmem [thread:$0]  (!%p2984_p11), %s2607_s17, 128, %s2612_s24, %s403_s10, %s2978_s20, %s2978_s20, %s2977_s28  }
  0xc7   : > { %s459_s29 = sshll.u32 %s450_s9, 4  ;;  %s2157_s6 = scalar_lea.hbm %s2647_s3, 256  ;;  %s2649_s29 = int_to_ptr.vmem [resolvable:$true] %s459_s29 }
  0xc8   : > { %p2158_p13 = scmp.ne.s32.totalorder %s2647_s3, %s2157_s6  ;;  %s2162_s20 = scalar_lea.hbm %s2912_s2, 512 }
  0xc9   : > { %p2163_p9 = scmp.lt.u32.totalorder %s2647_s3, %s2912_s2  ;;  %p2164_p0 = scmp.lt.u32.totalorder %s2162_s20, %s2157_s6 }
  0xca   : > { %p2160_p12 = pnand %p2158_p13, %p2983_p8  ;;  %p2166_p10 = scmp.lt.u32.totalorder %s2157_s6, %s2647_s3 }
  0xcb   : > { %p2165_p2 = por %p2164_p0, %p2163_p9 }
  0xcc   : > { %p2161_p3 = pneg %p2160_p12 }
  0xcd   : > { %p2167_p5 = por %p2166_p10, %p2165_p2 }
  0xcf   : > { %p2168_p7 = pnand %p2167_p5, %p2161_p3 }
  0xd1   : > { %2171 = shalt.err (!%p2168_p7)
}
  0xd2   : > { %s2172_s15 = scalar_lea.vmem %s2649_s29, 256  ;;  %s2291_s10 = smov [#allocation8]  }
  0xd3   : > { %p2173_p6 = scmp.ne.s32.totalorder %s2649_s29, %s2172_s15  ;;  %s2177_s26 = sshll.u32 %s2291_s10, 4  ;;  %s2178_s26 = int_to_ptr.vmem [resolvable:$false] %s2177_s26 }
  0xd4   : > { %s2179_s19 = scalar_lea.vmem %s2178_s26, 512  ;;  %p2180_p13 = scmp.lt.s32.totalorder %s2649_s29, %s2178_s26 }
  0xd5   : > { %p2175_p4 = pnand %p2173_p6, %p2983_p8  ;;  %p2181_p12 = scmp.lt.s32.totalorder %s2179_s19, %s2172_s15 }
  0xd7   : > { %p2176_p1 = pneg %p2175_p4  ;;  %p2182_p9 = por %p2181_p12, %p2180_p13 }
  0xd9   : > { %p2183_p0 = pnand %p2182_p9, %p2176_p1 }
  0xdb   : > { %2186 = shalt.err (!%p2183_p0)
}
  0xdc   : > { %s2292_s22 = smov 128   ;;  %s2293_s16 = smov 8  }
  0xdd   : > { %1854 = dma.hbm_to_vmem [thread:$0]  (!%p2984_p11), %s2647_s3, 256, %s2649_s29, %s2530_s5, %s2292_s22, %s2292_s22, %s2293_s16  }
  0xde   : > { %p2985_p8 = scmp.ne.s32.totalorder %s2964_s27, 0 }
  0xdf   : > { %s2676_s11 = sand.u32 (!%p2985_p8), 1, %s2265_s18   ;;  %p2986_p3 = scmp.ne.s32.totalorder (!%p2985_p8), %s2961_s25, 0 }
  0xe0   : > { %471 = sbr.rel (%p2985_p8) target bundleno = 2161 (0x871), region = 64  ;;  %s1625_s30 = sshll.u32 (!%p2985_p8), %s2676_s11, 3 }
  0xe1   : > { %s474_s9 = scalar_lea.sflag (!%p2985_p8), [#allocation4], %s2676_s11  ;;  %s2680_s12 = scalar_lea.vmem (!%p2985_p8), [#allocation3], %s1625_s30 }
  0xe7   : > { %2240 = dma.done.wait (%p2986_p3), %s474_s9, 128  }
  0xe8   : > { %2242 = vsyncadd (%p2986_p3), %s474_s9, 4294967168  ;;  %s482_s5 = sand.u32 1, %s2396_s23   ;;  %s2687_s14 = scalar_lea.vmem [#allocation6], %s1625_s30 }
  0xe9   : > { %s483_s27 = scalar_lea.sflag [#allocation7], %s482_s5 }
  0xea   : > { %2244 = dma.done.wait (%p2986_p3), %s483_s27, 384  }
  0xeb   : > { %2246 = vsyncadd (%p2986_p3), %s483_s27, 4294966912  ;;  %s1627_s29 = sshll.u32 %s2676_s11, 4  ;;  %p2987_p11 = scmp.eq.s32.totalorder %s2396_s23, 0 }
  0xec   : > { %s2696_s1 = scalar_lea.vmem [#allocation8], %s1627_s29 }
  0xed   : > { %2248 = dma.done.wait (%p2987_p11), [#allocation10], 1024   ;;  %p2988_p2 = pmov %p2987_p11 }
  0xef   : > { %2250 = vsyncadd (%p2988_p2), [#allocation10], 4294966272  ;;  %p2989_p10 = pmov %p2988_p2 }
  0xf0   : > { %p2990_p5 = pmov %p2988_p2 }
  0xf1   : > { %2252 = dma.done.wait (%p2989_p10), [#allocation13], 528  }
  0xf2   : > { %2254 = vsyncadd (%p2990_p5), [#allocation13], 4294966768  ;;  %v2294_v0 = vmov 0.0   ;;  %vm2295_vm0 = vmmov 0   ;;  %v1935_v1 = vld [vmem:[#allocation11] sm:$0xff]   ;;  %v1936_v2 = vld [vmem:[#allocation11 + $0x8] sm:$0xff]  }
  0xf3   : > { %1724 = vmatprep.subr.bf16.mxu1 %v2294_v0  ;;  %1712 = vmatprep.subr.bf16.mxu0 %v2294_v0  ;;  %v1937_v3 = vld [vmem:[#allocation9] sm:$0xff]   ;;  %v1939_v4 = vld [vmem:[#allocation9 + $0x8] sm:$0xff]   ;;  %v1938_v5 = vld [vmem:[#allocation11 + $0x10] sm:$0xff]   ;;  %vm610_vm1 = vcmask 523264   ;;  %s2991_s28 = sld [smem:[#allocation32_spill]]  ;;  %vm830_vm2 = vcmask 130048  }
  0xf4   : > { %1732 = vmatprep.mubr.msk.bf16.mxu1 %vm2295_vm0, %v2294_v0  ;;  %1720 = vmatprep.mubr.msk.bf16.mxu0 %vm2295_vm0, %v2294_v0  ;;  %v1941_v6 = vld [vmem:[#allocation9 + $0x10] sm:$0xff]   ;;  %v1940_v7 = vld [vmem:[#allocation11 + $0x18] sm:$0xff]   ;;  %v1942_v9 = vld [vmem:[%s2680_s12] sm:$0xff]   ;;  %s2296_s13 = smov 112   ;;  %s2297_s20 = smov 80   ;;  %vm1076_vm3 = vcmask 261248  }
  0xf5   : > { %1725 = vmatpush3.bf16.msra.mxu1 %v1935_v1  ;;  %1713 = vmatpush3.bf16.msra.mxu0 %v1937_v3  ;;  %v1943_v8 = vld [vmem:[#allocation9 + $0x18] sm:$0xff]   ;;  %v1945_v28 = vld [vmem:[#allocation12] sm:$0xff]   ;;  %v1946_v29 = vld [vmem:[#allocation12 + $0x8] sm:$0xff]   ;;  %s2298_s17 = smov 96   ;;  %s2992_s10 = sld [smem:[#allocation33_spill]]  ;;  %vm1204_vm4 = vcmask 392448  }
  0xf6   : > { %1726 = vmatprep.subr.bf16.mxu1 %v2294_v0  ;;  %1714 = vmatprep.subr.bf16.mxu0 %v2294_v0  ;;  %v1944_v10 = vld [vmem:[%s2687_s14] sm:$0xff]   ;;  %v2753_v32 = vld [vmem:[%s2696_s1] sm:$0xff]  ;;  %s2299_s22 = smov 16   ;;  %s2300_s5 = smov 32   ;;  %vm1332_vm5 = vcmask 523648  }
  0xf7   : > { %v1640_v11 = vld [vmem:[%s2917_s7] ss:$0 sm:$0xff]  ;;  %v1947_v30 = vld [vmem:[#allocation12 + $0x10] sm:$0xff]   ;;  %v1647_v55 = vld [vmem:[#allocation14] ss:$0 sm:$0xff]  ;;  %s2301_s27 = smov 48  }
  0xf8   : > { %v1948_v31 = vld [vmem:[#allocation12 + $0x18] sm:$0xff]   ;;  %s2993_s14 = sld [smem:[#allocation23_spill]]  ;;  %s2994_s25 = sld [smem:[#allocation34_spill]] }
  0xf9   : > { %1727 = vmatpush3.bf16.msra.mxu1 %v1936_v2  ;;  %1715 = vmatpush3.bf16.msra.mxu0 %v1939_v4  ;;  %v1633_v13 = vld [vmem:[%s2991_s28] ss:$0 sm:$0xff]  ;;  %s559_s3 = scalar_lea.vmem [#allocation15], %s1627_s29  ;;  %s2995_s6 = sld [smem:[#allocation27_spill]] }
  0xfa   : > { %1728 = vmatprep.subr.bf16.mxu1 %v2294_v0  ;;  %1716 = vmatprep.subr.bf16.mxu0 %v2294_v0  ;;  %v2756_v34 = vld [vmem:[%s2696_s1 + $0x8] sm:$0xff]  ;;  %s1436_s28 = sshll.u32 %s559_s3, 4  ;;  %s2996_s24 = sld [smem:[#allocation35_spill]]  ;;  %s2854_s28 = int_to_ptr.vmem [resolvable:$true] %s1436_s28 }
  0xfb   : > { %s1421_s29 = scalar_lea.sflag [#allocation5], %s2676_s11  ;;  %s2187_s26 = scalar_lea.vmem %s2854_s28, 256 }
  0xfc   : > { %p2188_p7 = scmp.ne.s32.totalorder %s2854_s28, %s2187_s26  ;;  %s2302_s19 = smov [#allocation15]  }
  0xfd   : > { %1729 = vmatpush3.bf16.msra.mxu1 %v1938_v5  ;;  %1717 = vmatpush3.bf16.msra.mxu0 %v1941_v6 }
  0xfe   : > { %1730 = vmatprep.subr.bf16.mxu1 %v2294_v0  ;;  %1718 = vmatprep.subr.bf16.mxu0 %v2294_v0 }
  0xff   : > { %p2997_p6 = scmp.ne.s32.totalorder %s2995_s6, 0 }
 0x101   : > { %1731 = vmatpush3.bf16.msra.mxu1 %v1940_v7  ;;  %1719 = vmatpush3.bf16.msra.mxu0 %v1943_v8  ;;  %p2189_p4 = pnand %p2188_p7, %p2997_p6 }
 0x102   : > { %1748 = vmatprep.subr.bf16.mxu1 %v2294_v0  ;;  %1736 = vmatprep.subr.bf16.mxu0 %v2294_v0 }
 0x103   : > { %p2190_p1 = pneg %p2189_p4 }
 0x104   : > { %1733 = vmatmul.mubr.msk.bf16.vlgmr.msra.gmra.mrb[0].mxu1 %vm610_vm1, %v1942_v9  ;;  %1721 = vmatmul.mubr.msk.bf16.vlgmr.msra.gmra.mrb[0].mxu0 %vm610_vm1, %v1944_v10 }
 0x105   : > { %1750 = vmatprep.mubr.msk.bf16.mxu1 %vm2295_vm0, %v2294_v0  ;;  %1744 = vmatprep.mubr.msk.bf16.mxu0 %vm2295_vm0, %v2294_v0 }
 0x106   : > { %1737 = vmatpush3.bf16.msra.mxu0 %v1945_v28 }
 0x107   : > { %1738 = vmatprep.subr.bf16.mxu0 %v2294_v0 }
 0x10a   : > { %1739 = vmatpush3.bf16.msra.mxu0 %v1946_v29 }
 0x10b   : > { %1740 = vmatprep.subr.bf16.mxu0 %v2294_v0 }
 0x10e   : > { %1741 = vmatpush3.bf16.msra.mxu0 %v1947_v30 }
 0x10f   : > { %1742 = vmatprep.subr.bf16.mxu0 %v2294_v0 }
 0x112   : > { %1743 = vmatpush3.bf16.msra.mxu0 %v1948_v31 }
 0x113   : > { %1772 = vmatprep.subr.bf16.mxu0 %v2294_v0 }
 0x115   : > { %1745 = vmatmul.mubr.msk.bf16.vlgmr.msra.gmra.mrb[4].mxu0 %vm610_vm1, %v1942_v9 }
 0x116   : > { %1774 = vmatprep.mubr.msk.bf16.mxu0 %vm2295_vm0, %v2294_v0 }
 0x1d7   : > { %v739_v12 = vpop.f32.mrb[0].mxu1  ;;  %v648_v16 = vpop.f32.mrb[0].mxu0 }
 0x1d8   : > { %v1734_v14 = vpop.f32.mrb[1].mxu1  ;;  %v740_v17 = vadd.f32 %v1640_v11, %v739_v12  ;;  %v649_v20 = vadd.f32 %v1633_v13, %v648_v16  ;;  %v1722_v21 = vpop.f32.mrb[1].mxu0 }
 0x1d9   : > { %v742_v15 = vpop.f32.mrb[2].mxu1  ;;  %v651_v22 = vpop.f32.mrb[2].mxu0 }
 0x1da   : > { %v743_v18 = vadd.f32 %v1640_v11, %v742_v15  ;;  %v1735_v19 = vpop.f32.mrb[3].mxu1  ;;  %v652_v24 = vadd.f32 %v1633_v13, %v651_v22  ;;  %v1723_v25 = vpop.f32.mrb[3].mxu0 }
 0x1dc   : > { %v2734_v23 = vpack.c.bf16 %v743_v18, %v740_v17  ;;  %v2736_v26 = vpack.c.bf16 %v652_v24, %v649_v20 }
 0x1de   : > { %v835_v27 = vsel %vm830_vm2, %v2734_v23, 0 }
 0x1df   : > { %1749 = vmatpush3.bf16.xpose.msra.mxu1 %v835_v27 }
 0x1e0   : > { %1754 = vmatprep.subr.bf16.mxu1 %v2294_v0 }
 0x1e6   : > { %1751 = vmatmul.mubr.msk.bf16.vlgmr.msra.gmra.mrb[4].mxu1 %vm830_vm2, %v2736_v26 }
 0x1e7   : > { %1756 = vmatprep.mubr.msk.bf16.mxu1 %vm2295_vm0, %v2294_v0 }
 0x1e8   : > { %v820_v52 = vpop.f32.mrb[4].mxu0 }
 0x1e9   : > { %v1746_v53 = vpop.f32.mrb[5].mxu0  ;;  %v821_v57 = vadd.f32 %v1647_v55, %v820_v52 }
 0x1ea   : > { %v823_v54 = vpop.f32.mrb[6].mxu0 }
 0x1eb   : > { %v1747_v56 = vpop.f32.mrb[7].mxu0  ;;  %v824_v58 = vadd.f32 %v1647_v55, %v823_v54 }
 0x1ed   : > { %v2770_v59 = vpack.c.bf16 %v824_v58, %v821_v57 }
 0x1ef   : > { %1755 = vmatpush3.bf16.msra.mxu1 %v2770_v59 }
 0x1f0   : > { %1760 = vmatprep.subr.bf16.mxu1 %v2294_v0 }
 0x2b9   : > { %v871_v33 = vpop.f32.mrb[4].mxu1 }
 0x2ba   : > { %v872_v35 = vadd.f32 %v871_v33, %v2753_v32  ;;  %v1752_v36 = vpop.f32.mrb[5].mxu1 }
 0x2bb   : > { %v874_v37 = vpop.f32.mrb[6].mxu1 }
 0x2bc   : > { %v875_v38 = vadd.f32 %v874_v37, %v2756_v34  ;;  %v1753_v39 = vpop.f32.mrb[7].mxu1  ;;  %v878_v40 = vsel %vm830_vm2, %v872_v35, -inf }
 0x2bd   : > { %879 = vmax.xlane.f32.xlu0 %v878_v40 }
 0x2be   : > { %v881_v41 = vsel %vm830_vm2, %v875_v38, -inf }
 0x2c1   : > { %882 = vmax.xlane.f32.xlu0 %v881_v41 }
 0x2d7   : > { %951 = vrot.lane.b32.xlu0 %v2734_v23, %s2296_s13 }
 0x2db   : > { %1208 = vrot.lane.b32.xlu0 %v2734_v23, %s2297_s20 }
 0x34a   : > { %v880_v42 = vpop.xlane.xlu0 %879 }
 0x34b   : > { %v884_v43 = vsub.f32 %v872_v35, %v880_v42 }
 0x34d   : > { %v886_v44 = vmul.f32 1.442695, %v884_v43 }
 0x34e   : > { %v883_v45 = vpop.xlane.xlu0 %882 }
 0x34f   : > { %1953 = vpow2.f32 %v886_v44  ;;  %v885_v46 = vsub.f32 %v875_v38, %v883_v45 }
 0x351   : > { %v888_v47 = vmul.f32 1.442695, %v885_v46 }
 0x352   : > { %v952_v63 = vpop.permute.xlu0 %951 }
 0x353   : > { %1955 = vpow2.f32 %v888_v47  ;;  %v957_v9 = vsel %vm830_vm2, %v952_v63, 0 }
 0x356   : > { %v1209_v7 = vpop.permute.xlu0 %1208 }
 0x357   : > { %v1214_v11 = vsel %vm830_vm2, %v1209_v7, 0 }
 0x359   : > { %v1954_v48 = vpop.eup %1953 }
 0x35a   : > { %v890_v49 = vsel %vm830_vm2, %v1954_v48, 0.0 }
 0x35b   : > { %891 = vadd.xlane.f32.xlu1 %v890_v49 }
 0x35d   : > { %v1956_v50 = vpop.eup %1955 }
 0x35e   : > { %v893_v51 = vsel %vm830_vm2, %v1956_v50, 0.0 }
 0x35f   : > { %894 = vadd.xlane.f32.xlu1 %v893_v51 }
 0x370   : > { %948 = vrot.lane.b32.xlu1 %v2736_v26, %s2296_s13 }
 0x374   : > { %1080 = vrot.lane.b32.xlu1 %v2734_v23, %s2298_s17 }
 0x378   : > { %1078 = vrot.lane.b32.xlu1 %v2736_v26, %s2298_s17 }
 0x37c   : > { %1206 = vrot.lane.b32.xlu1 %v2736_v26, %s2297_s20 }
 0x3e8   : > { %v892_v60 = vpop.xlane.xlu1 %891 }
 0x3e9   : > { %1957 = vrcp.f32 %v892_v60 }
 0x3ec   : > { %v895_v61 = vpop.xlane.xlu1 %894 }
 0x3ed   : > { %1959 = vrcp.f32 %v895_v61 }
 0x3f0   : > { %v949_v62 = vpop.permute.xlu1 %948 }
 0x3f3   : > { %v1958_v2 = vpop.eup %1957 }
 0x3f4   : > { %v1081_v1 = vpop.permute.xlu1 %1080  ;;  %v898_v5 = vmul.f32 %v1958_v2, %v1954_v48 }
 0x3f5   : > { %v1086_v3 = vsel %vm830_vm2, %v1081_v1, 0 }
 0x3f6   : > { %1773 = vmatpush3.bf16.xpose.msra.mxu0 %v1086_v3 }
 0x3f7   : > { %v1960_v4 = vpop.eup %1959  ;;  %1784 = vmatprep.subr.bf16.mxu0 %v2294_v0 }
 0x3f8   : > { %v899_v6 = vmul.f32 %v1960_v4, %v1956_v50  ;;  %v1079_v10 = vpop.permute.xlu1 %1078 }
 0x3fa   : > { %v900_v8 = vpack.c.bf16 %v899_v6, %v898_v5 }
 0x3fc   : > { %1757 = vmatmul.mubr.msk.bf16.vlgmr.msra.gmra.mrb[8].mxu1 %vm830_vm2, %v900_v8  ;;  %v1207_v12 = vpop.permute.xlu1 %1206 }
 0x3fd   : > { %1761 = vmatpush3.bf16.xpose.msra.mxu1 %v957_v9  ;;  %1775 = vmatmul.mubr.msk.bf16.vlgmr.msra.gmra.mrb[8].mxu0 %vm830_vm2, %v1079_v10 }
 0x3fe   : > { %1785 = vmatpush3.bf16.xpose.msra.mxu0 %v1214_v11  ;;  %1762 = vmatprep.mubr.msk.bf16.mxu1 %vm2295_vm0, %v2294_v0 }
 0x3ff   : > { %1786 = vmatprep.mubr.msk.bf16.mxu0 %vm2295_vm0, %v2294_v0  ;;  %1766 = vmatprep.subr.bf16.mxu1 %v2294_v0 }
 0x400   : > { %1796 = vmatprep.subr.bf16.mxu0 %v2294_v0 }
 0x404   : > { %1763 = vmatmul.mubr.msk.bf16.vlgmr.msra.gmra.mrb[12].mxu1 %vm830_vm2, %v949_v62 }
 0x405   : > { %1787 = vmatmul.mubr.msk.bf16.vlgmr.msra.gmra.mrb[12].mxu0 %vm830_vm2, %v1207_v12  ;;  %1768 = vmatprep.mubr.msk.bf16.mxu1 %vm2295_vm0, %v2294_v0 }
 0x406   : > { %1804 = vmatprep.mubr.msk.bf16.mxu0 %vm2295_vm0, %v2294_v0 }
 0x4cf   : > { %v938_v13 = vpop.f32.mrb[8].mxu1 }
 0x4d0   : > { %v1758_v14 = vpop.f32.mrb[9].mxu1  ;;  %v1122_v15 = vpop.f32.mrb[8].mxu0 }
 0x4d1   : > { %v941_v16 = vpop.f32.mrb[10].mxu1  ;;  %v1776_v17 = vpop.f32.mrb[9].mxu0  ;;  %v1123_v28 = vadd.f32 %v1122_v15, %v2753_v32 }
 0x4d2   : > { %v945_v18 = vpack.c.bf16 %v941_v16, %v938_v13  ;;  %v1759_v19 = vpop.f32.mrb[11].mxu1  ;;  %v1125_v20 = vpop.f32.mrb[10].mxu0 }
 0x4d3   : > { %v1777_v21 = vpop.f32.mrb[11].mxu0  ;;  %v1126_v38 = vadd.f32 %v1125_v20, %v2756_v34  ;;  %v1129_v39 = vsel %vm830_vm2, %v1123_v28, -inf }
 0x4d4   : > { %946 = vst.msk [vmem:[#allocation2] sm:$0xff] %vm830_vm2, %v945_v18 }
 0x4d5   : > { %v1132_v42 = vsel %vm830_vm2, %v1126_v38, -inf }
 0x4d7   : > { %v993_v22 = vpop.f32.mrb[12].mxu1 }
 0x4d8   : > { %v994_v23 = vadd.f32 %v993_v22, %v2753_v32  ;;  %v1764_v24 = vpop.f32.mrb[13].mxu1  ;;  %v1250_v25 = vpop.f32.mrb[12].mxu0 }
 0x4d9   : > { %v996_v26 = vpop.f32.mrb[14].mxu1  ;;  %v1788_v27 = vpop.f32.mrb[13].mxu0  ;;  %v1251_v41 = vadd.f32 %v1250_v25, %v2753_v32 }
 0x4da   : > { %v997_v29 = vadd.f32 %v996_v26, %v2756_v34  ;;  %v1765_v30 = vpop.f32.mrb[15].mxu1  ;;  %v1253_v31 = vpop.f32.mrb[14].mxu0  ;;  %v1000_v33 = vsel %vm830_vm2, %v994_v23, -inf }
 0x4db   : > { %1001 = vmax.xlane.f32.xlu0 %v1000_v33  ;;  %v1789_v35 = vpop.f32.mrb[15].mxu0  ;;  %v1254_v36 = vadd.f32 %v1253_v31, %v2756_v34  ;;  %v1257_v43 = vsel %vm830_vm2, %v1251_v41, -inf }
 0x4dc   : > { %v1003_v37 = vsel %vm830_vm2, %v997_v29, -inf }
 0x4dd   : > { %1004 = vmax.xlane.f32.xlu1 %v1003_v37  ;;  %v1260_v40 = vsel %vm830_vm2, %v1254_v36, -inf }
 0x4df   : > { %1130 = vmax.xlane.f32.xlu0 %v1129_v39  ;;  %v1950_v39 = vld [vmem:[%s2992_s10 + $0x8] sm:$0xff]  }
 0x4e1   : > { %1261 = vmax.xlane.f32.xlu1 %v1260_v40 }
 0x4e3   : > { %1133 = vmax.xlane.f32.xlu0 %v1132_v42 }
 0x4e7   : > { %1258 = vmax.xlane.f32.xlu0 %v1257_v43  ;;  %v1951_v43 = vld [vmem:[%s2992_s10 + $0x10] sm:$0xff]  }
 0x568   : > { %v1002_v44 = vpop.xlane.xlu0 %1001 }
 0x569   : > { %v1006_v52 = vsub.f32 %v994_v23, %v1002_v44 }
 0x56a   : > { %v1005_v45 = vpop.xlane.xlu1 %1004 }
 0x56b   : > { %v1007_v53 = vsub.f32 %v997_v29, %v1005_v45  ;;  %v1008_v57 = vmul.f32 1.442695, %v1006_v52 }
 0x56c   : > { %v1131_v46 = vpop.xlane.xlu0 %1130 }
 0x56d   : > { %v1135_v47 = vsub.f32 %v1123_v28, %v1131_v46  ;;  %v1010_v58 = vmul.f32 1.442695, %v1007_v53  ;;  %v1952_v46 = vld [vmem:[%s2992_s10 + $0x18] sm:$0xff]  }
 0x56e   : > { %v1262_v48 = vpop.xlane.xlu1 %1261 }
 0x56f   : > { %v1137_v34 = vmul.f32 1.442695, %v1135_v47  ;;  %v1264_v49 = vsub.f32 %v1254_v36, %v1262_v48  ;;  %v1949_v36 = vld [vmem:[%s2992_s10] sm:$0xff]  }
 0x570   : > { %v1134_v50 = vpop.xlane.xlu0 %1133  ;;  %1797 = vmatpush3.bf16.msra.mxu0 %v1949_v36 }
 0x571   : > { %1961 = vpow2.f32 %v1137_v34  ;;  %v1136_v51 = vsub.f32 %v1126_v38, %v1134_v50  ;;  %v1267_v54 = vmul.f32 1.442695, %v1264_v49  ;;  %1798 = vmatprep.subr.bf16.mxu0 %v2294_v0 }
 0x573   : > { %v1139_v32 = vmul.f32 1.442695, %v1136_v51 }
 0x574   : > { %v1259_v55 = vpop.xlane.xlu0 %1258  ;;  %1799 = vmatpush3.bf16.msra.mxu0 %v1950_v39 }
 0x575   : > { %1963 = vpow2.f32 %v1139_v32  ;;  %v1263_v56 = vsub.f32 %v1251_v41, %v1259_v55  ;;  %1800 = vmatprep.subr.bf16.mxu0 %v2294_v0  ;;  %v1661_v55 = vld [vmem:[%s2994_s25] ss:$0 sm:$0xff] }
 0x576   : > { %1965 = vpow2.f32 %v1267_v54 }
 0x577   : > { %v1265_v60 = vmul.f32 1.442695, %v1263_v56 }
 0x578   : > { %1801 = vmatpush3.bf16.msra.mxu0 %v1951_v43 }
 0x579   : > { %1967 = vpow2.f32 %v1265_v60  ;;  %1802 = vmatprep.subr.bf16.mxu0 %v2294_v0 }
 0x57a   : > { %1969 = vpow2.f32 %v1008_v57 }
 0x57b   : > { %v1962_v61 = vpop.eup %1961  ;;  %1971 = vpow2.f32 %v1010_v58 }
 0x57c   : > { %v1141_v62 = vsel %vm830_vm2, %v1962_v61, 0.0  ;;  %1803 = vmatpush3.bf16.msra.mxu0 %v1952_v46 }
 0x57d   : > { %1142 = vadd.xlane.f32.xlu0 %v1141_v62 }
 0x57f   : > { %v1964_v63 = vpop.eup %1963 }
 0x580   : > { %v1144_v1 = vsel %vm830_vm2, %v1964_v63, 0.0  ;;  %v1966_v2 = vpop.eup %1965 }
 0x581   : > { %1145 = vadd.xlane.f32.xlu1 %v1144_v1  ;;  %v1272_v6 = vsel %vm830_vm2, %v1966_v2, 0.0 }
 0x583   : > { %v1968_v3 = vpop.eup %1967 }
 0x584   : > { %v1970_v4 = vpop.eup %1969  ;;  %v1269_v5 = vsel %vm830_vm2, %v1968_v3, 0.0 }
 0x585   : > { %v1972_v7 = vpop.eup %1971  ;;  %1270 = vadd.xlane.f32.xlu0 %v1269_v5  ;;  %1273 = vadd.xlane.f32.xlu1 %v1272_v6  ;;  %v1012_v8 = vsel %vm830_vm2, %v1970_v4, 0.0 }
 0x586   : > { %v1015_v9 = vsel %vm830_vm2, %v1972_v7, 0.0 }
 0x589   : > { %1013 = vadd.xlane.f32.xlu0 %v1012_v8  ;;  %1016 = vadd.xlane.f32.xlu1 %v1015_v9 }
 0x59a   : > { %1152 = vrot.lane.b32.xlu1 %v2770_v59, %s2298_s17 }
 0x59e   : > { %1280 = vrot.lane.b32.xlu1 %v2770_v59, %s2297_s20 }
 0x59f   : > { %1024 = vrot.lane.b32.xlu0 %v2770_v59, %s2296_s13  ;;  %s1675_s13 = sshll.u32 %s2993_s14, 8 }
 0x5a0   : > { %s2859_s15 = scalar_lea.hbm %s2996_s24, %s1675_s13 }
 0x60a   : > { %v1143_v10 = vpop.xlane.xlu0 %1142 }
 0x60e   : > { %v1146_v11 = vpop.xlane.xlu1 %1145 }
 0x612   : > { %v1271_v12 = vpop.xlane.xlu0 %1270  ;;  %v1274_v13 = vpop.xlane.xlu1 %1273 }
 0x616   : > { %v1014_v14 = vpop.xlane.xlu0 %1013  ;;  %v1017_v15 = vpop.xlane.xlu1 %1016 }
 0x617   : > { %1973 = vrcp.f32 %v1014_v14 }
 0x618   : > { %1975 = vrcp.f32 %v1017_v15 }
 0x619   : > { %1977 = vrcp.f32 %v1146_v11 }
 0x61a   : > { %v1025_v16 = vpop.permute.xlu0 %1024  ;;  %1979 = vrcp.f32 %v1143_v10  ;;  %v1153_v22 = vpop.permute.xlu1 %1152 }
 0x61b   : > { %1767 = vmatpush3.bf16.msra.mxu1 %v1025_v16  ;;  %1981 = vrcp.f32 %v1271_v12 }
 0x61c   : > { %1778 = vmatprep.subr.bf16.mxu1 %v2294_v0  ;;  %1983 = vrcp.f32 %v1274_v13 }
 0x61e   : > { %v1281_v29 = vpop.permute.xlu1 %1280 }
 0x621   : > { %v1974_v17 = vpop.eup %1973 }
 0x622   : > { %v1976_v18 = vpop.eup %1975  ;;  %v1020_v19 = vmul.f32 %v1974_v17, %v1970_v4 }
 0x623   : > { %v1021_v20 = vmul.f32 %v1976_v18, %v1972_v7  ;;  %v1978_v21 = vpop.eup %1977 }
 0x624   : > { %v1980_v23 = vpop.eup %1979  ;;  %v1150_v24 = vmul.f32 %v1978_v21, %v1964_v63 }
 0x625   : > { %v1022_v59 = vpack.c.bf16 %v1021_v20, %v1020_v19  ;;  %v1149_v25 = vmul.f32 %v1980_v23, %v1962_v61  ;;  %v1982_v26 = vpop.eup %1981 }
 0x626   : > { %v1984_v28 = vpop.eup %1983  ;;  %v1277_v30 = vmul.f32 %v1982_v26, %v1968_v3 }
 0x627   : > { %1769 = vmatmul.mubr.msk.bf16.vlgmr.msra.gmra.mrb[16].mxu1 %vm830_vm2, %v1022_v59  ;;  %v1151_v27 = vpack.c.bf16 %v1150_v24, %v1149_v25  ;;  %v1278_v31 = vmul.f32 %v1984_v28, %v1966_v2 }
 0x628   : > { %1779 = vmatpush3.bf16.msra.mxu1 %v1153_v22  ;;  %1780 = vmatprep.mubr.msk.bf16.mxu1 %vm2295_vm0, %v2294_v0 }
 0x629   : > { %1790 = vmatprep.subr.bf16.mxu1 %v2294_v0  ;;  %v1279_v33 = vpack.c.bf16 %v1278_v31, %v1277_v30 }
 0x62f   : > { %1781 = vmatmul.mubr.msk.bf16.vlgmr.msra.gmra.mrb[20].mxu1 %vm830_vm2, %v1151_v27 }
 0x630   : > { %1791 = vmatpush3.bf16.msra.mxu1 %v1281_v29  ;;  %1792 = vmatprep.mubr.msk.bf16.mxu1 %vm2295_vm0, %v2294_v0 }
 0x637   : > { %1793 = vmatmul.mubr.msk.bf16.vlgmr.msra.gmra.mrb[24].mxu1 %vm830_vm2, %v1279_v33 }
 0x6fa   : > { %v1064_v35 = vpop.f32.mrb[16].mxu1 }
 0x6fb   : > { %v1770_v37 = vpop.f32.mrb[17].mxu1 }
 0x6fc   : > { %v1067_v38 = vpop.f32.mrb[18].mxu1 }
 0x6fd   : > { %v1071_v40 = vpack.c.bf16 %v1067_v38, %v1064_v35  ;;  %v1771_v41 = vpop.f32.mrb[19].mxu1 }
 0x6ff   : > { %1073 = vrot.lane.b32.xlu1 %v1071_v40, %s2299_s22  ;;  %s2191_s22 = sshll.u32 %s2302_s19, 4  ;;  %s2192_s22 = int_to_ptr.vmem [resolvable:$false] %s2191_s22 }
 0x700   : > { %s2193_s16 = scalar_lea.vmem %s2192_s22, 512  ;;  %p2194_p13 = scmp.lt.s32.totalorder %s2854_s28, %s2192_s22 }
 0x701   : > { %p2195_p12 = scmp.lt.s32.totalorder %s2193_s16, %s2187_s26 }
 0x702   : > { %v1192_v42 = vpop.f32.mrb[20].mxu1 }
 0x703   : > { %v1782_v44 = vpop.f32.mrb[21].mxu1  ;;  %p2196_p9 = por %p2195_p12, %p2194_p13 }
 0x704   : > { %v1195_v45 = vpop.f32.mrb[22].mxu1 }
 0x705   : > { %v1199_v47 = vpack.c.bf16 %v1195_v45, %v1192_v42  ;;  %v1783_v48 = vpop.f32.mrb[23].mxu1  ;;  %p2197_p0 = pnand %p2196_p9, %p2190_p1 }
 0x707   : > { %1201 = vrot.lane.b32.xlu0 %v1199_v47, %s2300_s5 }
 0x70a   : > { %v1320_v34 = vpop.f32.mrb[24].mxu1 }
 0x70b   : > { %v1794_v49 = vpop.f32.mrb[25].mxu1 }
 0x70c   : > { %v1323_v50 = vpop.f32.mrb[26].mxu1 }
 0x70d   : > { %v1327_v51 = vpack.c.bf16 %v1323_v50, %v1320_v34  ;;  %v1795_v52 = vpop.f32.mrb[27].mxu1 }
 0x70f   : > { %1329 = vrot.lane.b32.xlu1 %v1327_v51, %s2301_s27 }
 0x771   : > { %v1074_v53 = vpop.permute.xlu1 %1073 }
 0x772   : > { %1077 = vst.msk [vmem:[#allocation2] sm:$0xff] %vm1076_vm3, %v1074_v53 }
 0x779   : > { %v1202_v54 = vpop.permute.xlu0 %1201 }
 0x77a   : > { %1205 = vst.msk [vmem:[#allocation2] sm:$0xff] %vm1204_vm4, %v1202_v54 }
 0x781   : > { %v1330_v0 = vpop.permute.xlu1 %1329 }
 0x782   : > { %1333 = vst.msk [vmem:[#allocation2] sm:$0xff] %vm1332_vm5, %v1330_v0 }
 0x789   : > { %v1334_v32 = vld [vmem:[#allocation2] sm:$0xff] }
 0x78a   : > { %1805 = vmatmul.mubr.msk.bf16.vlgmr.msra.gmra.mrb[16].mxu0 %vm610_vm1, %v1334_v32 }
 0x85d   : > { %v1411_v56 = vpop.f32.mrb[16].mxu0 }
 0x85e   : > { %v1412_v57 = vadd.f32 %v1661_v55, %v1411_v56  ;;  %v1806_v58 = vpop.f32.mrb[17].mxu0 }
 0x85f   : > { %v1414_v60 = vpop.f32.mrb[18].mxu0 }
 0x860   : > { %1418 = vst.msk [vmem:[%s559_s3] sm:$0xff] %vm610_vm1, %v1412_v57  ;;  %v1415_v61 = vadd.f32 %v1661_v55, %v1414_v60  ;;  %v1807_v62 = vpop.f32.mrb[19].mxu0 }
 0x862   : > { %1419 = vst.msk [vmem:[%s559_s3 + $0x8] sm:$0xff] %vm610_vm1, %v1415_v61 }
 0x863   : > { %2200 = shalt.err (!%p2197_p0)
}
 0x864   : > { %s2201_s30 = scalar_lea.hbm %s2859_s15, 256  ;;  %s2205_s5 = scalar_lea.hbm %s2996_s24, 512 }
 0x865   : > { %p2202_p8 = scmp.ne.s32.totalorder %s2859_s15, %s2201_s30  ;;  %p2206_p2 = scmp.lt.u32.totalorder %s2859_s15, %s2996_s24 }
 0x866   : > { %p2207_p10 = scmp.lt.u32.totalorder %s2205_s5, %s2201_s30  ;;  %p2209_p7 = scmp.lt.u32.totalorder %s2201_s30, %s2859_s15 }
 0x867   : > { %p2203_p3 = pnand %p2202_p8, %p2997_p6 }
 0x868   : > { %p2208_p5 = por %p2207_p10, %p2206_p2 }
 0x869   : > { %p2204_p11 = pneg %p2203_p3 }
 0x86a   : > { %p2210_p4 = por %p2209_p7, %p2208_p5 }
 0x86c   : > { %p2211_p1 = pnand %p2210_p4, %p2204_p11 }
 0x86e   : > { %2214 = shalt.err (!%p2211_p1)
}
 0x86f   : > { %s2303_s1 = smov 128   ;;  %s2304_s23 = smov 8  }
 0x870   : > { %1830 = dma.vmem_to_hbm [thread:$0]  (%p2997_p6), %s2854_s28, 256, %s2859_s15, %s1421_s29, %s2303_s1, %s2303_s1, %s2304_s23  }
 0x871 PF: > { %s2998_s25 = sld [smem:[#allocation21_spill]]  ;;  %s2999_s3 = sld [smem:[#allocation25_spill]] }
 0x872   : > { %s3000_s13 = sld [smem:[#allocation24_spill]] }
 0x877   : > { %s1451_s20 = sand.u32 1, %s2998_s25   ;;  %p3001_p13 = scmp.ne.s32.totalorder %s2999_s3, 0 }
 0x878   : > { %p3002_p12 = scmp.ge.s32.totalorder %s3000_s13, 2  ;;  %s1452_s17 = scalar_lea.sflag [#allocation5], %s1451_s20 }
 0x87a   : > { %p1856_p9 = pnand %p3002_p12, %p3001_p13 }
 0x87c   : > { %2256 = dma.done.wait (!%p1856_p9), %s1452_s17, 256  }
 0x87d   : > { %2258 = vsyncadd (!%p1856_p9), %s1452_s17, 4294967040  ;;  %s32_s22 = sadd.s32 1, %s3000_s13   ;;  %s3003_s26 = sld [smem:[#allocation22_spill]] }
 0x87e   : > { %p29_p0 = scmp.ge.s32.totalorder %s32_s22, 4   ;;  %s3004_s19 = sld [smem:[#allocation28_spill]] }
 0x87f   : > { %s3005_s11 = sld [smem:[#allocation26_spill]]  ;;  %s3006_s17 = smov %s2265_s18 }
 0x880   : > { %s3008_s20 = smov %s2277_s21  ;;  %31 = sbr.rel (!%p29_p0) target bundleno = 18 (0x12), region = 149 }
 0x883   : > { %s3007_s18 = smov %s3003_s26 }
 0x885   : > { %s3009_s21 = smov %s3005_s11 }
 0x887   :  { %1457 = vsyncpa [#allocation4], 1 }
 0x888   :  { %1459 = vsyncpa [#allocation4 + $0x1], 1 }
 0x889   :  { %1460 = vsyncpa [#allocation7], 1 }
 0x88a   :  { %1462 = vsyncpa [#allocation7 + $0x1], 1 }
 0x88b   :  { %1463 = vsyncpa [#allocation10], 1 }
 0x88c   :  { %1464 = vsyncpa [#allocation13], 1 }
 0x88d   :  { %1465 = vsyncpa [#allocation5], 1 }
 0x88e   :  { %1467 = vsyncpa [#allocation5 + $0x1], 1 }

</bundles_post_ra>
